<compile_context>
chip_gen: v7x
topology: tpu7x:2x2x1
jax: 0.10.0
libtpu: 0.0.40
codegen_flags: <defaults>
</compile_context>

<pallas_src>
import jax
import jax.numpy as jnp
from jax.experimental import pallas as pl
from jax.experimental.pallas import tpu as pltpu


def _corr_conv_kernel(cur_ref, ref_ref, out_ref):
    # cur_ref: (C, tile_pc)  current-frame features  (one batch, one Pc tile)
    # ref_ref: (C, tile_pr)  reference features      (one batch, one Pr tile)
    # out_ref: (tile_pc, tile_pr)
    out_ref[...] = jax.lax.dot_general(
        cur_ref[...],
        ref_ref[...],
        dimension_numbers=(((0,), (0,)), ((), ())),   # contract over channels
        preferred_element_type=jnp.float32,
    ).astype(out_ref.dtype)


def _pick_tile(dim, target, align):
    """Largest legal tile: full extent if it fits, else an `align`-multiple."""
    if dim <= target:
        return dim                      # full-extent block is always legal
    return max((target // align) * align, align)


def corr_conv_forward(ref_features, cur_features, *, tile_pc=512, tile_pr=512):
    """Equivalent of CorrConv().forward(ref_features, cur_features).

    Returns corr of shape (B, cur_h, cur_w, ref_h, ref_w), float32.
    """
    B, C, Hr, Wr = ref_features.shape
    Bc, Cc, Hc, Wc = cur_features.shape
    assert (B, C) == (Bc, Cc), "batch/channel mismatch between ref and cur"
    Pr = Hr * Wr
    Pc = Hc * Wc

    # Pure reshapes (free): keep channels on sublanes, positions on lanes.
    cur_f = cur_features.reshape(B, C, Pc)   # (B, C, Pc)
    ref_f = ref_features.reshape(B, C, Pr)   # (B, C, Pr)

    # Tile sizes: last (lane) dims must be multiples of 128 or full extent.
    tpc = _pick_tile(Pc, tile_pc, 128)
    tpr = _pick_tile(Pr, tile_pr, 128)
    grid = (B, pl.cdiv(Pc, tpc), pl.cdiv(Pr, tpr))

    # Scoped-VMEM limit sized from the actual footprint (double-buffered
    # tiles + headroom), clamped to the smallest physical VMEM (v7x: 64 MiB).
    in_itemsize = max(cur_f.dtype.itemsize, ref_f.dtype.itemsize)
    tile_bytes = (C * tpc + C * tpr) * in_itemsize + tpc * tpr * 4
    vmem_limit = int(min(max(4 * tile_bytes + (2 << 20), 16 << 20), 64 << 20))

    out = pl.pallas_call(
        _corr_conv_kernel,
        out_shape=jax.ShapeDtypeStruct((B, Pc, Pr), jnp.float32),
        grid=grid,
        in_specs=[
            # cur tile changes only when the Pc-grid index changes -> Pallas
            # skips the redundant DMA across the inner Pr loop.
            pl.BlockSpec((pl.Squeezed(), C, tpc), lambda b, i, j: (b, 0, i)),
            pl.BlockSpec((pl.Squeezed(), C, tpr), lambda b, i, j: (b, 0, j)),
        ],
        out_specs=pl.BlockSpec(
            (pl.Squeezed(), tpc, tpr), lambda b, i, j: (b, i, j)
        ),
        compiler_params=pltpu.CompilerParams(
            # No cross-iteration accumulation -> every axis is independent and
            # can be sharded across TensorCores (v7x megacore).
            dimension_semantics=("parallel", "parallel", "parallel"),
            vmem_limit_bytes=vmem_limit,
        ),
    )(cur_f, ref_f)

    return out.reshape(B, Hc, Wc, Hr, Wr)


if __name__ == "__main__":
    key = jax.random.PRNGKey(0)
    k1, k2 = jax.random.split(key)

    B, C, H, W = 2, 4, 16, 16
    ref_features = jax.random.normal(k1, (B, C, H, W), dtype=jnp.float32)
    cur_features = jax.random.normal(k2, (B, C, H, W), dtype=jnp.float32)

    out = corr_conv_forward(ref_features, cur_features)
    out = jax.block_until_ready(out)
    assert out.shape == (B, H, W, H, W)

    # Pure-JAX reference (same math as the PyTorch grouped 1x1 conv).
    want = jnp.einsum(
        "bchw,bcxy->bhwxy",
        cur_features,
        ref_features,
        precision=jax.lax.Precision.HIGHEST,
    )
    max_err = float(jnp.max(jnp.abs(out - want)))
    assert jnp.allclose(out, want, rtol=1e-3, atol=1e-3), max_err

    print("KERNEL_OK")
</pallas_src>

<mosaic_0001>
module attributes {stable_mosaic.version = 11 : i64} {
  func.func @_corr_conv_kernel(%arg0: i32, %arg1: i32, %arg2: i32, %arg3: memref<1x4x256xf32, #tpu.memory_space<vmem>>, %arg4: memref<1x4x256xf32, #tpu.memory_space<vmem>>, %arg5: memref<1x256x256xf32, #tpu.memory_space<vmem>>) attributes {dimension_semantics = [#tpu.dimension_semantics<parallel>, #tpu.dimension_semantics<parallel>, #tpu.dimension_semantics<parallel>], iteration_bounds = array<i64: 2, 1, 1>, scalar_prefetch = 0 : i64, scratch_operands = 0 : i64, tpu.core_type = #tpu.core_type<tc>, window_params = [{transform_indices = @transform_0, window_bounds = array<i64: 1, 4, 256>}, {transform_indices = @transform_1, window_bounds = array<i64: 1, 4, 256>}, {transform_indices = @transform_2, window_bounds = array<i64: 1, 256, 256>}]} {
    %c0 = arith.constant 0 : index
    %c0_0 = arith.constant 0 : index
    %c0_1 = arith.constant 0 : index
    %0 = vector.load %arg3[%c0, %c0_0, %c0_1] : memref<1x4x256xf32, #tpu.memory_space<vmem>>, vector<1x4x256xf32>
    %1 = vector.shape_cast %0 : vector<1x4x256xf32> to vector<4x256xf32>
    %c0_2 = arith.constant 0 : index
    %c0_3 = arith.constant 0 : index
    %c0_4 = arith.constant 0 : index
    %2 = vector.load %arg4[%c0_2, %c0_3, %c0_4] : memref<1x4x256xf32, #tpu.memory_space<vmem>>, vector<1x4x256xf32>
    %3 = vector.shape_cast %2 : vector<1x4x256xf32> to vector<4x256xf32>
    %cst = arith.constant dense<0.000000e+00> : vector<256x256xf32>
    %4 = tpu.matmul %1, %3, %cst {dimension_numbers = #tpu.dot_dimension_numbers<[0], [0], [1], [1], [0, 1, 1, 1], [], []>} : vector<4x256xf32>, vector<4x256xf32>, vector<256x256xf32> -> vector<256x256xf32>
    %c0_5 = arith.constant 0 : index
    %c0_6 = arith.constant 0 : index
    %c0_7 = arith.constant 0 : index
    %5 = vector.load %arg5[%c0_5, %c0_6, %c0_7] : memref<1x256x256xf32, #tpu.memory_space<vmem>>, vector<1x256x256xf32>
    %6 = vector.shape_cast %5 : vector<1x256x256xf32> to vector<256x256xf32>
    %7 = vector.shape_cast %4 : vector<256x256xf32> to vector<1x256x256xf32>
    tpu.vector_store %arg5[%c0_5, %c0_6, %c0_7], %7 {strides = array<i32>} : memref<1x256x256xf32, #tpu.memory_space<vmem>>, vector<1x256x256xf32>,
    return
  }
  func.func @transform_0(%arg0: i32, %arg1: i32, %arg2: i32) -> (i32, i32, i32) {
    %c0_i32 = arith.constant 0 : i32
    %c0_i32_0 = arith.constant 0 : i32
    return %arg0, %c0_i32, %arg1 : i32, i32, i32
  }
  func.func @transform_1(%arg0: i32, %arg1: i32, %arg2: i32) -> (i32, i32, i32) {
    %c0_i32 = arith.constant 0 : i32
    %c0_i32_0 = arith.constant 0 : i32
    return %arg0, %c0_i32, %arg2 : i32, i32, i32
  }
  func.func @transform_2(%arg0: i32, %arg1: i32, %arg2: i32) -> (i32, i32, i32) {
    %c0_i32 = arith.constant 0 : i32
    return %arg0, %arg1, %arg2 : i32, i32, i32
  }
}

</mosaic_0001>

<bundles_post_ra>
// kernel: tpu_custom_call.1
= control target key start
LH: loop header
LB: loop body
LE: loop exit
PB: predicated region body
PF: predicated region fallthrough
CT: control target
= control target key end

     0   :  { %7 = vsyncpa [#allocation3], 0  ;;  %s1517_s0 = inlined_call_operand.hbm [shape: f32[2,4,256], index: 0, kind: input, shape index: {}]   ;;  %s1518_s1 = inlined_call_operand.hbm [shape: f32[2,4,256], index: 1, kind: input, shape index: {}]   ;;  %s1519_s2 = inlined_call_operand.hbm [shape: f32[2,256,256], index: 2, kind: output, shape index: {}]  }
   0x1   :  { %9 = vsyncpa [#allocation3 + $0x1], 0 }
   0x2   :  { %10 = vsyncpa [#allocation6], 0 }
   0x3   :  { %12 = vsyncpa [#allocation6 + $0x1], 0 }
   0x4   :  { %13 = vsyncpa [#allocation4], 0 }
   0x5   :  { %15 = vsyncpa [#allocation4 + $0x1], 0  ;;  %s1163_s9 = smov 0   ;;  %s1165_s10 = smov 0  }
   0x6   :  { %s1167_s11 = smov 0   ;;  %s1169_s12 = smov 0  }
   0x7   :  { %s1171_s13 = smov 0   ;;  %s1173_s14 = smov 0  }
   0x8 LB: > { %s864_s15 = sadd.s32 4294967295, %s1140_s14   ;;  %s865_s16 = sadd.s32 4294967294, %s1140_s14   ;;  %s1140_s14 = sphi %s1173_s14, %s21_s14   ;;  %s1136_s13 = sphi %s1171_s13, %s1539_s13   ;;  %s1132_s12 = sphi %s1169_s12, %s1538_s12   ;;  %s1128_s11 = sphi %s1167_s11, %s1537_s11   ;;  %s1124_s10 = sphi %s1165_s10, %s1536_s10   ;;  %s1120_s9 = sphi %s1163_s9, %s1535_s9  }
   0x9   : > { %s40_s17 = sadd.s32 1, %s1136_s13  ;;  %s49_s18 = sadd.s32 1, %s1128_s11 }
   0xa   : > { %p42_p0 = scmp.ge.s32.totalorder %s40_s17, 2  ;;  %p56_p1 = scmp.ne.s32.totalorder %s1128_s11, %s1124_s10 }
   0xb   : > { %p57_p2 = scmp.eq.s32.totalorder %s1140_s14, 0  ;;  %p62_p3 = scmp.ne.s32.totalorder %s1124_s10, %s1120_s9 }
   0xc   : > { %s1541_s17 = smov (%p42_p0, %s40_s17), 0  ;;  %p63_p5 = scmp.eq.s32.totalorder %s864_s15, 0 }
   0xd   : > { %p1204_p4 = por %p57_p2, %p56_p1  ;;  %s44_s20 = ssub.s32 %s1136_s13, %s1541_s17 }
   0xe   : > { %p118_p6 = scmp.eq.s32.totalorder %s864_s15, 1  ;;  %p47_p7 = scmp.eq.s32.totalorder %s44_s20, 0 }
   0xf   : > { %p1210_p8 = por %p63_p5, %p62_p3  ;;  %p124_p10 = scmp.eq.s32.totalorder %s865_s16, 1 }
  0x10   : > { %p1214_p9 = por %p118_p6, %p56_p1  ;;  %p939_p13 = scmp.lt.s32.totalorder %s1140_s14, 2 }
  0x11   : > { %s1523_s21 = scalar_select %p1210_p8, 1, 0 }
  0x12   : > { %s1524_s22 = scalar_select %p1214_p9, 1, 0 }
  0x13   : > { %s1219_s23 = scalar_select %p47_p7, %s1128_s11, %s49_s18  }
  0x14   : > { %p1221_p11 = por %p124_p10, %p62_p3  ;;  %s1228_s25 = sand.u32 1, %s1128_s11  }
  0x15   : > { %s868_s26 = sshll.u32 %s1228_s25, 3  ;;  %s917_s27 = sshll.u32 %s1136_s13, 7 }
  0x16   : > { %s1525_s24 = scalar_select %p1221_p11, 1, 0 }
  0x17   : > { %s1237_s30 = scalar_lea.hbm %s1517_s0, %s917_s27  ;;  %s148_s3 = scalar_lea.vmem [#allocation2], %s868_s26 }
  0x18   : > { %s158_s4 = sshll.u32 %s148_s3, 4  ;;  %p1245_p0 = pnand %p939_p13, %p1204_p4  ;;  %s1241_s4 = int_to_ptr.vmem [resolvable:$true] %s158_s4 }
  0x19   : > { %s145_s6 = scalar_lea.sflag [#allocation3], %s1228_s25  ;;  %s994_s7 = scalar_lea.hbm %s1237_s30, 128 }
  0x1a   : > { %p995_p3 = scmp.ne.s32.totalorder %s1237_s30, %s994_s7  ;;  %p996_p5 = pneg %p1245_p0 }
  0x1b   : > { %s999_s16 = scalar_lea.hbm %s1517_s0, 256  ;;  %p1000_p4 = scmp.lt.u32.totalorder %s1237_s30, %s1517_s0 }
  0x1c   : > { %p997_p6 = pnand %p996_p5, %p995_p3  ;;  %p1001_p10 = scmp.lt.u32.totalorder %s999_s16, %s994_s7 }
  0x1d   : > { %p1003_p12 = scmp.lt.u32.totalorder %s994_s7, %s1237_s30 }
  0x1e   : > { %p998_p7 = pneg %p997_p6  ;;  %p1002_p13 = por %p1001_p10, %p1000_p4 }
  0x20   : > { %p1004_p1 = por %p1003_p12, %p1002_p13 }
  0x22   : > { %p1005_p2 = pnand %p1004_p1, %p998_p7 }
  0x24   : > { %1008 = shalt.err (!%p1005_p2)
}
  0x25   : > { %s1009_s20 = scalar_lea.vmem %s1241_s4, 128  ;;  %s1142_s28 = smov [#allocation2]  }
  0x26   : > { %p1010_p3 = scmp.ne.s32.totalorder %s1241_s4, %s1009_s20  ;;  %s1014_s29 = sshll.u32 %s1142_s28, 4  ;;  %s1015_s29 = int_to_ptr.vmem [resolvable:$false] %s1014_s29 }
  0x27   : > { %s1016_s3 = scalar_lea.vmem %s1015_s29, 256  ;;  %p1017_p9 = scmp.lt.s32.totalorder %s1241_s4, %s1015_s29 }
  0x28   : > { %p1012_p6 = pnand %p1010_p3, %p996_p5  ;;  %p1018_p4 = scmp.lt.s32.totalorder %s1016_s3, %s1009_s20 }
  0x2a   : > { %p1013_p11 = pneg %p1012_p6  ;;  %p1019_p10 = por %p1018_p4, %p1017_p9 }
  0x2c   : > { %p1020_p12 = pnand %p1019_p10, %p1013_p11 }
  0x2e   : > { %1023 = shalt.err (!%p1020_p12)
}
  0x2f   : > { %931 = dma.hbm_to_vmem [thread:$0]  (!%p1245_p0), %s1237_s30, 128, %s1241_s4, %s145_s6  }
  0x30   : > { %p1527_p1 = scmp.lt.s32.totalorder %s1140_s14, 3  ;;  %p1528_p2 = scmp.ge.s32.totalorder %s1140_s14, 1 }
  0x31   : > { %s1290_s16 = scalar_lea.hbm %s1518_s1, %s917_s27  ;;  %s169_s18 = scalar_lea.vmem [#allocation5], %s868_s26 }
  0x32   : > { %p1281_p7 = pnand %p1528_p2, %p1527_p1  ;;  %s179_s19 = sshll.u32 %s169_s18, 4  ;;  %s180_s19 = int_to_ptr.vmem [resolvable:$true] %s179_s19 }
  0x33   : > { %s166_s30 = scalar_lea.sflag [#allocation6], %s1228_s25  ;;  %s1024_s4 = scalar_lea.hbm %s1290_s16, 128 }
  0x34   : > { %s1529_s7 = scalar_select %p1281_p7, 1, 0 }
  0x35   : > { %p1025_p9 = scmp.ne.s32.totalorder %s1290_s16, %s1024_s4  ;;  %s1029_s27 = scalar_lea.hbm %s1518_s1, 256 }
  0x36   : > { %p1030_p3 = scmp.lt.u32.totalorder %s1290_s16, %s1518_s1  ;;  %p1031_p6 = scmp.lt.u32.totalorder %s1029_s27, %s1024_s4 }
  0x37   : > { %p1027_p11 = pnand %p1025_p9, %p996_p5  ;;  %p1033_p10 = scmp.lt.u32.totalorder %s1024_s4, %s1290_s16 }
  0x38   : > { %p1032_p4 = por %p1031_p6, %p1030_p3 }
  0x39   : > { %p1028_p13 = pneg %p1027_p11 }
  0x3a   : > { %p1034_p12 = por %p1033_p10, %p1032_p4 }
  0x3c   : > { %p1035_p1 = pnand %p1034_p12, %p1028_p13 }
  0x3e   : > { %1038 = shalt.err (!%p1035_p1)
}
  0x3f   : > { %s1039_s25 = scalar_lea.vmem %s180_s19, 128  ;;  %s1143_s26 = smov [#allocation5]  }
  0x40   : > { %p1040_p2 = scmp.ne.s32.totalorder %s180_s19, %s1039_s25  ;;  %s1044_s3 = sshll.u32 %s1143_s26, 4  ;;  %s1045_s3 = int_to_ptr.vmem [resolvable:$false] %s1044_s3 }
  0x41   : > { %s1046_s8 = scalar_lea.vmem %s1045_s3, 256  ;;  %p1047_p8 = scmp.lt.s32.totalorder %s180_s19, %s1045_s3 }
  0x42   : > { %p1042_p9 = pnand %p1040_p2, %p996_p5  ;;  %p1048_p7 = scmp.lt.s32.totalorder %s1046_s8, %s1039_s25 }
  0x44   : > { %p1043_p11 = pneg %p1042_p9  ;;  %p1049_p3 = por %p1048_p7, %p1047_p8 }
  0x46   : > { %p1050_p6 = pnand %p1049_p3, %p1043_p11 }
  0x48   : > { %1053 = shalt.err (!%p1050_p6)
}
  0x49   : > { %934 = dma.hbm_to_vmem [thread:$0]  (!%p1245_p0), %s1290_s16, 128, %s180_s19, %s166_s30  }
  0x4a   : > { %p1530_p13 = scmp.ne.s32.totalorder %s1529_s7, 0 }
  0x4b   : > { %s1317_s15 = sand.u32 (!%p1530_p13), 1, %s1124_s10   ;;  %p1531_p5 = scmp.ne.s32.totalorder (!%p1530_p13), %s1523_s21, 0 }
  0x4c   : > { %188 = sbr.rel (%p1530_p13) target bundleno = 569 (0x239), region = 28  ;;  %s875_s18 = sshll.u32 (!%p1530_p13), %s1317_s15, 3 }
  0x4d   : > { %s191_s4 = scalar_lea.sflag (!%p1530_p13), [#allocation3], %s1317_s15  ;;  %s194_s6 = scalar_lea.vmem (!%p1530_p13), [#allocation2], %s875_s18 }
  0x53   : > { %1107 = dma.done.wait (%p1531_p5), %s191_s4, 128  }
  0x54   : > { %1109 = vsyncadd (%p1531_p5), %s191_s4, 4294967168  ;;  %s200_s5 = scalar_lea.sflag [#allocation6], %s1317_s15  ;;  %s203_s16 = scalar_lea.vmem [#allocation5], %s875_s18 }
  0x55   : > { %1111 = dma.done.wait (%p1531_p5), %s200_s5, 128  }
  0x56   : > { %1113 = vsyncadd (%p1531_p5), %s200_s5, 4294967168  ;;  %v1144_v0 = vmov 0.0   ;;  %v233_v1 = vld [vmem:[%s194_s6] sm:$0xff]  ;;  %v234_v2 = vld [vmem:[%s203_s16] sm:$0xff]  ;;  %vm401_vm0 = vcmask 1043456   ;;  %vm304_vm1 = vcmask 31744  }
  0x57   : > { %470 = vmatprep.mubr.f32.mxu0 %v1144_v0  ;;  %566 = vmatprep.mubr.f32.mxu1 %v1144_v0  ;;  %v303_v3 = vcombine.high %v234_v2, %v234_v2  ;;  %v236_v4 = vcombine.high %v233_v1, %v233_v1  ;;  %s877_s21 = sshll.u32 %s1317_s15, 9  ;;  %s919_s19 = sshll.u32 %s1132_s12, 13 }
  0x58   : > { %238 = vxpose.xlu0.b32.start.end [1/1] (short) %v233_v1, 128  ;;  %s1395_s7 = scalar_lea.vmem [#allocation7], %s877_s21  ;;  %s1464_s28 = scalar_lea.hbm %s1519_s2, %s919_s19 }
  0x59   : > { %878 = vmatprep.subr.msk.mxu0 %vm401_vm0, %v303_v3  ;;  %920 = vmatprep.subr.msk.mxu1 %vm401_vm0, %v303_v3  ;;  %s746_s30 = sshll.u32 %s1395_s7, 4  ;;  %s728_s29 = scalar_lea.sflag [#allocation4], %s1317_s15  ;;  %s1466_s30 = int_to_ptr.vmem [resolvable:$true] %s746_s30 }
  0x5a   : > { %879 = vmatpush1.msk.msra.mxu0 %vm401_vm0, %v234_v2  ;;  %921 = vmatpush1.msk.msra.mxu1 %vm401_vm0, %v234_v2  ;;  %s1054_s12 = scalar_lea.vmem %s1466_s30, 8192  ;;  %p1532_p0 = scmp.ne.s32.totalorder %s1524_s22, 0 }
  0x5b   : > { %p1055_p8 = scmp.ne.s32.totalorder %s1466_s30, %s1054_s12  ;;  %s1145_s25 = smov [#allocation7]  }
  0x5c   : > { %s1058_s26 = sshll.u32 %s1145_s25, 4  ;;  %s1059_s26 = int_to_ptr.vmem [resolvable:$false] %s1058_s26 }
  0x5d   : > { %p1056_p7 = pnand %p1055_p8, %p1532_p0  ;;  %s1060_s3 = scalar_lea.vmem %s1059_s26, 16384 }
  0x5e   : > { %p1061_p10 = scmp.lt.s32.totalorder %s1466_s30, %s1059_s26  ;;  %p1062_p12 = scmp.lt.s32.totalorder %s1060_s3, %s1054_s12 }
  0x5f   : > { %p1057_p4 = pneg %p1056_p7 }
  0x60   : > { %p1063_p1 = por %p1062_p12, %p1061_p10 }
  0x62   : > { %p1064_p2 = pnand %p1063_p1, %p1057_p4 }
  0x95   : > { %270 = vxpose.xlu0.b32.start.end [1/1] (short) %v236_v4, 128 }
  0xd8   : > { %v254_v5 = vpop.trf.xlu0 }
  0xd9   : > { %880 = vmatmul.mubr.msk.f32.vlgmr.msra.gmra.mrb[0].mxu0 %vm304_vm1, %v254_v5 }
  0xda   : > { %476 = vmatprep.mubr.f32.mxu0 %v1144_v0 }
  0xdc   : > { %v255_v6 = vpop.trf.xlu0 }
  0xdd   : > { %881 = vmatmul.mubr.msk.f32.gmra.mrb[2].mxu0 %vm304_vm1, %v255_v6 }
  0xde   : > { %482 = vmatprep.mubr.f32.mxu0 %v1144_v0 }
  0xe0   : > { %v256_v7 = vpop.trf.xlu0 }
  0xe1   : > { %882 = vmatmul.mubr.msk.f32.gmra.mrb[4].mxu0 %vm304_vm1, %v256_v7 }
  0xe2   : > { %488 = vmatprep.mubr.f32.mxu0 %v1144_v0 }
  0xe4   : > { %v257_v8 = vpop.trf.xlu0 }
  0xe5   : > { %883 = vmatmul.mubr.msk.f32.gmra.mrb[6].mxu0 %vm304_vm1, %v257_v8 }
  0xe6   : > { %494 = vmatprep.mubr.f32.mxu0 %v1144_v0 }
  0xe8   : > { %v258_v9 = vpop.trf.xlu0 }
  0xe9   : > { %884 = vmatmul.mubr.msk.f32.gmra.mrb[8].mxu0 %vm304_vm1, %v258_v9 }
  0xea   : > { %500 = vmatprep.mubr.f32.mxu0 %v1144_v0 }
  0xec   : > { %v259_v10 = vpop.trf.xlu0 }
  0xed   : > { %885 = vmatmul.mubr.msk.f32.gmra.mrb[10].mxu0 %vm304_vm1, %v259_v10 }
  0xee   : > { %506 = vmatprep.mubr.f32.mxu0 %v1144_v0 }
  0xf0   : > { %v260_v11 = vpop.trf.xlu0 }
  0xf1   : > { %886 = vmatmul.mubr.msk.f32.gmra.mrb[12].mxu0 %vm304_vm1, %v260_v11 }
  0xf2   : > { %512 = vmatprep.mubr.f32.mxu0 %v1144_v0 }
  0xf4   : > { %v261_v12 = vpop.trf.xlu0 }
  0xf5   : > { %887 = vmatmul.mubr.msk.f32.gmra.mrb[14].mxu0 %vm304_vm1, %v261_v12 }
  0xf6   : > { %518 = vmatprep.mubr.f32.mxu0 %v1144_v0 }
  0xf8   : > { %v262_v13 = vpop.trf.xlu0 }
  0xf9   : > { %888 = vmatmul.mubr.msk.f32.gmra.mrb[16].mxu0 %vm304_vm1, %v262_v13 }
  0xfa   : > { %524 = vmatprep.mubr.f32.mxu0 %v1144_v0 }
  0xfc   : > { %v263_v14 = vpop.trf.xlu0 }
  0xfd   : > { %889 = vmatmul.mubr.msk.f32.gmra.mrb[18].mxu0 %vm304_vm1, %v263_v14 }
  0xfe   : > { %530 = vmatprep.mubr.f32.mxu0 %v1144_v0 }
 0x100   : > { %v264_v15 = vpop.trf.xlu0 }
 0x101   : > { %890 = vmatmul.mubr.msk.f32.gmra.mrb[20].mxu0 %vm304_vm1, %v264_v15 }
 0x102   : > { %536 = vmatprep.mubr.f32.mxu0 %v1144_v0 }
 0x104   : > { %v265_v16 = vpop.trf.xlu0 }
 0x105   : > { %891 = vmatmul.mubr.msk.f32.gmra.mrb[22].mxu0 %vm304_vm1, %v265_v16 }
 0x106   : > { %542 = vmatprep.mubr.f32.mxu0 %v1144_v0 }
 0x108   : > { %v266_v17 = vpop.trf.xlu0 }
 0x109   : > { %892 = vmatmul.mubr.msk.f32.gmra.mrb[24].mxu0 %vm304_vm1, %v266_v17 }
 0x10a   : > { %548 = vmatprep.mubr.f32.mxu0 %v1144_v0 }
 0x10c   : > { %v267_v18 = vpop.trf.xlu0 }
 0x10d   : > { %893 = vmatmul.mubr.msk.f32.gmra.mrb[26].mxu0 %vm304_vm1, %v267_v18 }
 0x10e   : > { %554 = vmatprep.mubr.f32.mxu0 %v1144_v0 }
 0x110   : > { %v268_v19 = vpop.trf.xlu0 }
 0x111   : > { %894 = vmatmul.mubr.msk.f32.gmra.mrb[28].mxu0 %vm304_vm1, %v268_v19 }
 0x112   : > { %560 = vmatprep.mubr.f32.mxu0 %v1144_v0 }
 0x114   : > { %v269_v20 = vpop.trf.xlu0 }
 0x115   : > { %895 = vmatmul.mubr.msk.f32.gmra.mrb[30].mxu0 %vm304_vm1, %v269_v20 }
 0x118   : > { %v286_v21 = vpop.trf.xlu0 }
 0x119   : > { %896 = vmatmul.mubr.msk.f32.vlgmr.msra.gmra.mrb[0].mxu1 %vm304_vm1, %v286_v21 }
 0x11a   : > { %572 = vmatprep.mubr.f32.mxu1 %v1144_v0 }
 0x11c   : > { %v287_v22 = vpop.trf.xlu0 }
 0x11d   : > { %897 = vmatmul.mubr.msk.f32.gmra.mrb[2].mxu1 %vm304_vm1, %v287_v22 }
 0x11e   : > { %578 = vmatprep.mubr.f32.mxu1 %v1144_v0 }
 0x120   : > { %v288_v23 = vpop.trf.xlu0 }
 0x121   : > { %898 = vmatmul.mubr.msk.f32.gmra.mrb[4].mxu1 %vm304_vm1, %v288_v23 }
 0x122   : > { %584 = vmatprep.mubr.f32.mxu1 %v1144_v0 }
 0x124   : > { %v289_v24 = vpop.trf.xlu0 }
 0x125   : > { %899 = vmatmul.mubr.msk.f32.gmra.mrb[6].mxu1 %vm304_vm1, %v289_v24 }
 0x126   : > { %590 = vmatprep.mubr.f32.mxu1 %v1144_v0 }
 0x128   : > { %v290_v25 = vpop.trf.xlu0 }
 0x129   : > { %900 = vmatmul.mubr.msk.f32.gmra.mrb[8].mxu1 %vm304_vm1, %v290_v25 }
 0x12a   : > { %596 = vmatprep.mubr.f32.mxu1 %v1144_v0 }
 0x12c   : > { %v291_v26 = vpop.trf.xlu0 }
 0x12d   : > { %901 = vmatmul.mubr.msk.f32.gmra.mrb[10].mxu1 %vm304_vm1, %v291_v26 }
 0x12e   : > { %602 = vmatprep.mubr.f32.mxu1 %v1144_v0 }
 0x130   : > { %v292_v27 = vpop.trf.xlu0 }
 0x131   : > { %902 = vmatmul.mubr.msk.f32.gmra.mrb[12].mxu1 %vm304_vm1, %v292_v27 }
 0x132   : > { %608 = vmatprep.mubr.f32.mxu1 %v1144_v0 }
 0x134   : > { %v293_v28 = vpop.trf.xlu0 }
 0x135   : > { %903 = vmatmul.mubr.msk.f32.gmra.mrb[14].mxu1 %vm304_vm1, %v293_v28 }
 0x136   : > { %614 = vmatprep.mubr.f32.mxu1 %v1144_v0 }
 0x138   : > { %v294_v29 = vpop.trf.xlu0 }
 0x139   : > { %904 = vmatmul.mubr.msk.f32.gmra.mrb[16].mxu1 %vm304_vm1, %v294_v29 }
 0x13a   : > { %620 = vmatprep.mubr.f32.mxu1 %v1144_v0 }
 0x13c   : > { %v295_v30 = vpop.trf.xlu0 }
 0x13d   : > { %905 = vmatmul.mubr.msk.f32.gmra.mrb[18].mxu1 %vm304_vm1, %v295_v30 }
 0x13e   : > { %626 = vmatprep.mubr.f32.mxu1 %v1144_v0 }
 0x140   : > { %v296_v31 = vpop.trf.xlu0 }
 0x141   : > { %906 = vmatmul.mubr.msk.f32.gmra.mrb[20].mxu1 %vm304_vm1, %v296_v31 }
 0x142   : > { %632 = vmatprep.mubr.f32.mxu1 %v1144_v0 }
 0x144   : > { %v297_v32 = vpop.trf.xlu0 }
 0x145   : > { %907 = vmatmul.mubr.msk.f32.gmra.mrb[22].mxu1 %vm304_vm1, %v297_v32 }
 0x146   : > { %638 = vmatprep.mubr.f32.mxu1 %v1144_v0 }
 0x148   : > { %v298_v33 = vpop.trf.xlu0 }
 0x149   : > { %908 = vmatmul.mubr.msk.f32.gmra.mrb[24].mxu1 %vm304_vm1, %v298_v33 }
 0x14a   : > { %644 = vmatprep.mubr.f32.mxu1 %v1144_v0 }
 0x14c   : > { %v299_v34 = vpop.trf.xlu0 }
 0x14d   : > { %909 = vmatmul.mubr.msk.f32.gmra.mrb[26].mxu1 %vm304_vm1, %v299_v34 }
 0x14e   : > { %650 = vmatprep.mubr.f32.mxu1 %v1144_v0 }
 0x150   : > { %v300_v35 = vpop.trf.xlu0 }
 0x151   : > { %910 = vmatmul.mubr.msk.f32.gmra.mrb[28].mxu1 %vm304_vm1, %v300_v35 }
 0x152   : > { %656 = vmatprep.mubr.f32.mxu1 %v1144_v0 }
 0x154   : > { %v301_v36 = vpop.trf.xlu0 }
 0x155   : > { %911 = vmatmul.mubr.msk.f32.gmra.mrb[30].mxu1 %vm304_vm1, %v301_v36 }
 0x1ac   : > { %v472_v37 = vpop.f32.mrb[0].mxu0 }
 0x1ad   : > { %663 = vst [vmem:[%s1395_s7] sm:$0xff] %v472_v37  ;;  %v474_v38 = vpop.f32.mrb[1].mxu0 }
 0x1ae   : > { %664 = vst [vmem:[%s1395_s7 + $0x8] sm:$0xff] %v474_v38 }
 0x1b0   : > { %v478_v39 = vpop.f32.mrb[2].mxu0 }
 0x1b1   : > { %665 = vst [vmem:[%s1395_s7 + $0x10] sm:$0xff] %v478_v39  ;;  %v480_v40 = vpop.f32.mrb[3].mxu0 }
 0x1b2   : > { %666 = vst [vmem:[%s1395_s7 + $0x18] sm:$0xff] %v480_v40 }
 0x1b4   : > { %v484_v41 = vpop.f32.mrb[4].mxu0 }
 0x1b5   : > { %667 = vst [vmem:[%s1395_s7 + $0x20] sm:$0xff] %v484_v41  ;;  %v486_v42 = vpop.f32.mrb[5].mxu0 }
 0x1b6   : > { %668 = vst [vmem:[%s1395_s7 + $0x28] sm:$0xff] %v486_v42 }
 0x1b8   : > { %v490_v43 = vpop.f32.mrb[6].mxu0 }
 0x1b9   : > { %669 = vst [vmem:[%s1395_s7 + $0x30] sm:$0xff] %v490_v43  ;;  %v492_v44 = vpop.f32.mrb[7].mxu0 }
 0x1ba   : > { %670 = vst [vmem:[%s1395_s7 + $0x38] sm:$0xff] %v492_v44 }
 0x1bc   : > { %v496_v45 = vpop.f32.mrb[8].mxu0 }
 0x1bd   : > { %671 = vst [vmem:[%s1395_s7 + $0x40] sm:$0xff] %v496_v45  ;;  %v498_v46 = vpop.f32.mrb[9].mxu0 }
 0x1be   : > { %672 = vst [vmem:[%s1395_s7 + $0x48] sm:$0xff] %v498_v46 }
 0x1c0   : > { %v502_v47 = vpop.f32.mrb[10].mxu0 }
 0x1c1   : > { %673 = vst [vmem:[%s1395_s7 + $0x50] sm:$0xff] %v502_v47  ;;  %v504_v48 = vpop.f32.mrb[11].mxu0 }
 0x1c2   : > { %674 = vst [vmem:[%s1395_s7 + $0x58] sm:$0xff] %v504_v48 }
 0x1c4   : > { %v508_v49 = vpop.f32.mrb[12].mxu0 }
 0x1c5   : > { %675 = vst [vmem:[%s1395_s7 + $0x60] sm:$0xff] %v508_v49  ;;  %v510_v50 = vpop.f32.mrb[13].mxu0 }
 0x1c6   : > { %676 = vst [vmem:[%s1395_s7 + $0x68] sm:$0xff] %v510_v50 }
 0x1c8   : > { %v514_v51 = vpop.f32.mrb[14].mxu0 }
 0x1c9   : > { %677 = vst [vmem:[%s1395_s7 + $0x70] sm:$0xff] %v514_v51  ;;  %v516_v52 = vpop.f32.mrb[15].mxu0 }
 0x1ca   : > { %678 = vst [vmem:[%s1395_s7 + $0x78] sm:$0xff] %v516_v52 }
 0x1cc   : > { %v520_v53 = vpop.f32.mrb[16].mxu0 }
 0x1cd   : > { %679 = vst [vmem:[%s1395_s7 + $0x80] sm:$0xff] %v520_v53  ;;  %v522_v54 = vpop.f32.mrb[17].mxu0 }
 0x1ce   : > { %680 = vst [vmem:[%s1395_s7 + $0x88] sm:$0xff] %v522_v54 }
 0x1d0   : > { %v526_v55 = vpop.f32.mrb[18].mxu0 }
 0x1d1   : > { %681 = vst [vmem:[%s1395_s7 + $0x90] sm:$0xff] %v526_v55  ;;  %v528_v56 = vpop.f32.mrb[19].mxu0 }
 0x1d2   : > { %682 = vst [vmem:[%s1395_s7 + $0x98] sm:$0xff] %v528_v56 }
 0x1d4   : > { %v532_v57 = vpop.f32.mrb[20].mxu0 }
 0x1d5   : > { %683 = vst [vmem:[%s1395_s7 + $0xa0] sm:$0xff] %v532_v57  ;;  %v534_v58 = vpop.f32.mrb[21].mxu0 }
 0x1d6   : > { %684 = vst [vmem:[%s1395_s7 + $0xa8] sm:$0xff] %v534_v58 }
 0x1d8   : > { %v538_v59 = vpop.f32.mrb[22].mxu0 }
 0x1d9   : > { %685 = vst [vmem:[%s1395_s7 + $0xb0] sm:$0xff] %v538_v59  ;;  %v540_v60 = vpop.f32.mrb[23].mxu0 }
 0x1da   : > { %686 = vst [vmem:[%s1395_s7 + $0xb8] sm:$0xff] %v540_v60 }
 0x1dc   : > { %v544_v61 = vpop.f32.mrb[24].mxu0 }
 0x1dd   : > { %687 = vst [vmem:[%s1395_s7 + $0xc0] sm:$0xff] %v544_v61  ;;  %v546_v62 = vpop.f32.mrb[25].mxu0 }
 0x1de   : > { %688 = vst [vmem:[%s1395_s7 + $0xc8] sm:$0xff] %v546_v62 }
 0x1e0   : > { %v550_v63 = vpop.f32.mrb[26].mxu0 }
 0x1e1   : > { %689 = vst [vmem:[%s1395_s7 + $0xd0] sm:$0xff] %v550_v63  ;;  %v552_v0 = vpop.f32.mrb[27].mxu0 }
 0x1e2   : > { %690 = vst [vmem:[%s1395_s7 + $0xd8] sm:$0xff] %v552_v0 }
 0x1e4   : > { %v556_v1 = vpop.f32.mrb[28].mxu0 }
 0x1e5   : > { %691 = vst [vmem:[%s1395_s7 + $0xe0] sm:$0xff] %v556_v1  ;;  %v558_v2 = vpop.f32.mrb[29].mxu0 }
 0x1e6   : > { %692 = vst [vmem:[%s1395_s7 + $0xe8] sm:$0xff] %v558_v2 }
 0x1e8   : > { %v562_v3 = vpop.f32.mrb[30].mxu0 }
 0x1e9   : > { %693 = vst [vmem:[%s1395_s7 + $0xf0] sm:$0xff] %v562_v3  ;;  %v564_v4 = vpop.f32.mrb[31].mxu0 }
 0x1ea   : > { %694 = vst [vmem:[%s1395_s7 + $0xf8] sm:$0xff] %v564_v4 }
 0x1ec   : > { %v568_v5 = vpop.f32.mrb[0].mxu1 }
 0x1ed   : > { %695 = vst [vmem:[%s1395_s7 + $0x100] sm:$0xff] %v568_v5  ;;  %v570_v6 = vpop.f32.mrb[1].mxu1 }
 0x1ee   : > { %696 = vst [vmem:[%s1395_s7 + $0x108] sm:$0xff] %v570_v6 }
 0x1f0   : > { %v574_v7 = vpop.f32.mrb[2].mxu1 }
 0x1f1   : > { %697 = vst [vmem:[%s1395_s7 + $0x110] sm:$0xff] %v574_v7  ;;  %v576_v8 = vpop.f32.mrb[3].mxu1 }
 0x1f2   : > { %698 = vst [vmem:[%s1395_s7 + $0x118] sm:$0xff] %v576_v8 }
 0x1f4   : > { %v580_v9 = vpop.f32.mrb[4].mxu1 }
 0x1f5   : > { %699 = vst [vmem:[%s1395_s7 + $0x120] sm:$0xff] %v580_v9  ;;  %v582_v10 = vpop.f32.mrb[5].mxu1 }
 0x1f6   : > { %700 = vst [vmem:[%s1395_s7 + $0x128] sm:$0xff] %v582_v10 }
 0x1f8   : > { %v586_v11 = vpop.f32.mrb[6].mxu1 }
 0x1f9   : > { %701 = vst [vmem:[%s1395_s7 + $0x130] sm:$0xff] %v586_v11  ;;  %v588_v12 = vpop.f32.mrb[7].mxu1 }
 0x1fa   : > { %702 = vst [vmem:[%s1395_s7 + $0x138] sm:$0xff] %v588_v12 }
 0x1fc   : > { %v592_v13 = vpop.f32.mrb[8].mxu1 }
 0x1fd   : > { %703 = vst [vmem:[%s1395_s7 + $0x140] sm:$0xff] %v592_v13  ;;  %v594_v14 = vpop.f32.mrb[9].mxu1 }
 0x1fe   : > { %704 = vst [vmem:[%s1395_s7 + $0x148] sm:$0xff] %v594_v14 }
 0x200   : > { %v598_v15 = vpop.f32.mrb[10].mxu1 }
 0x201   : > { %705 = vst [vmem:[%s1395_s7 + $0x150] sm:$0xff] %v598_v15  ;;  %v600_v16 = vpop.f32.mrb[11].mxu1 }
 0x202   : > { %706 = vst [vmem:[%s1395_s7 + $0x158] sm:$0xff] %v600_v16 }
 0x204   : > { %v604_v17 = vpop.f32.mrb[12].mxu1 }
 0x205   : > { %707 = vst [vmem:[%s1395_s7 + $0x160] sm:$0xff] %v604_v17  ;;  %v606_v18 = vpop.f32.mrb[13].mxu1 }
 0x206   : > { %708 = vst [vmem:[%s1395_s7 + $0x168] sm:$0xff] %v606_v18 }
 0x208   : > { %v610_v19 = vpop.f32.mrb[14].mxu1 }
 0x209   : > { %709 = vst [vmem:[%s1395_s7 + $0x170] sm:$0xff] %v610_v19  ;;  %v612_v20 = vpop.f32.mrb[15].mxu1 }
 0x20a   : > { %710 = vst [vmem:[%s1395_s7 + $0x178] sm:$0xff] %v612_v20 }
 0x20c   : > { %v616_v21 = vpop.f32.mrb[16].mxu1 }
 0x20d   : > { %711 = vst [vmem:[%s1395_s7 + $0x180] sm:$0xff] %v616_v21  ;;  %v618_v22 = vpop.f32.mrb[17].mxu1 }
 0x20e   : > { %712 = vst [vmem:[%s1395_s7 + $0x188] sm:$0xff] %v618_v22 }
 0x210   : > { %v622_v23 = vpop.f32.mrb[18].mxu1 }
 0x211   : > { %713 = vst [vmem:[%s1395_s7 + $0x190] sm:$0xff] %v622_v23  ;;  %v624_v24 = vpop.f32.mrb[19].mxu1 }
 0x212   : > { %714 = vst [vmem:[%s1395_s7 + $0x198] sm:$0xff] %v624_v24 }
 0x214   : > { %v628_v25 = vpop.f32.mrb[20].mxu1 }
 0x215   : > { %715 = vst [vmem:[%s1395_s7 + $0x1a0] sm:$0xff] %v628_v25  ;;  %v630_v26 = vpop.f32.mrb[21].mxu1 }
 0x216   : > { %716 = vst [vmem:[%s1395_s7 + $0x1a8] sm:$0xff] %v630_v26 }
 0x218   : > { %v634_v27 = vpop.f32.mrb[22].mxu1 }
 0x219   : > { %717 = vst [vmem:[%s1395_s7 + $0x1b0] sm:$0xff] %v634_v27  ;;  %v636_v28 = vpop.f32.mrb[23].mxu1 }
 0x21a   : > { %718 = vst [vmem:[%s1395_s7 + $0x1b8] sm:$0xff] %v636_v28 }
 0x21c   : > { %v640_v29 = vpop.f32.mrb[24].mxu1 }
 0x21d   : > { %719 = vst [vmem:[%s1395_s7 + $0x1c0] sm:$0xff] %v640_v29  ;;  %v642_v30 = vpop.f32.mrb[25].mxu1 }
 0x21e   : > { %720 = vst [vmem:[%s1395_s7 + $0x1c8] sm:$0xff] %v642_v30 }
 0x220   : > { %v646_v31 = vpop.f32.mrb[26].mxu1 }
 0x221   : > { %721 = vst [vmem:[%s1395_s7 + $0x1d0] sm:$0xff] %v646_v31  ;;  %v648_v32 = vpop.f32.mrb[27].mxu1 }
 0x222   : > { %722 = vst [vmem:[%s1395_s7 + $0x1d8] sm:$0xff] %v648_v32 }
 0x224   : > { %v652_v33 = vpop.f32.mrb[28].mxu1 }
 0x225   : > { %723 = vst [vmem:[%s1395_s7 + $0x1e0] sm:$0xff] %v652_v33  ;;  %v654_v34 = vpop.f32.mrb[29].mxu1 }
 0x226   : > { %724 = vst [vmem:[%s1395_s7 + $0x1e8] sm:$0xff] %v654_v34 }
 0x228   : > { %v658_v35 = vpop.f32.mrb[30].mxu1 }
 0x229   : > { %725 = vst [vmem:[%s1395_s7 + $0x1f0] sm:$0xff] %v658_v35  ;;  %v660_v36 = vpop.f32.mrb[31].mxu1 }
 0x22a   : > { %726 = vst [vmem:[%s1395_s7 + $0x1f8] sm:$0xff] %v660_v36 }
 0x22b   : > { %1067 = shalt.err (!%p1064_p2)
}
 0x22c   : > { %s1068_s8 = scalar_lea.hbm %s1464_s28, 8192  ;;  %s1072_s6 = scalar_lea.hbm %s1519_s2, 16384 }
 0x22d   : > { %p1069_p9 = scmp.ne.s32.totalorder %s1464_s28, %s1068_s8  ;;  %p1073_p6 = scmp.lt.u32.totalorder %s1464_s28, %s1519_s2 }
 0x22e   : > { %p1074_p13 = scmp.lt.u32.totalorder %s1072_s6, %s1068_s8  ;;  %p1076_p8 = scmp.lt.u32.totalorder %s1068_s8, %s1464_s28 }
 0x22f   : > { %p1070_p11 = pnand %p1069_p9, %p1532_p0 }
 0x230   : > { %p1075_p5 = por %p1074_p13, %p1073_p6 }
 0x231   : > { %p1071_p3 = pneg %p1070_p11 }
 0x232   : > { %p1077_p7 = por %p1076_p8, %p1075_p5 }
 0x234   : > { %p1078_p4 = pnand %p1077_p7, %p1071_p3 }
 0x236   : > { %1081 = shalt.err (!%p1078_p4)
}
 0x237   : > { %s1146_s21 = smov 256   ;;  %s1147_s7 = smov 16  }
 0x238   : > { %926 = dma.vmem_to_hbm [thread:$0]  (%p1532_p0), %s1466_s30, 8192, %s1464_s28, %s728_s29, %s1146_s21, %s1146_s21, %s1147_s7  }
 0x239 PF: > { %s761_s19 = sand.u32 1, %s1120_s9   ;;  %p1533_p10 = scmp.ne.s32.totalorder %s1525_s24, 0 }
 0x23a   : > { %p1534_p12 = scmp.ge.s32.totalorder %s1140_s14, 2  ;;  %s762_s20 = scalar_lea.sflag [#allocation4], %s761_s19 }
 0x23c   : > { %p936_p1 = pnand %p1534_p12, %p1533_p10 }
 0x23e   : > { %1115 = dma.done.wait (!%p936_p1), %s762_s20, 8192  }
 0x23f   : > { %1117 = vsyncadd (!%p936_p1), %s762_s20, 4294959104  ;;  %s21_s14 = sadd.s32 1, %s1140_s14   ;;  %s1535_s9 = smov %s1124_s10 }
 0x240   : > { %p18_p2 = scmp.ge.s32.totalorder %s21_s14, 4   ;;  %s1536_s10 = smov %s1128_s11 }
 0x241   : > { %s1537_s11 = smov %s1219_s23  ;;  %s1538_s12 = smov %s1136_s13 }
 0x242   : > { %s1539_s13 = smov %s1541_s17  ;;  %20 = sbr.rel (!%p18_p2) target bundleno = 8 (0x8), region = 86 }
 0x249   :  { %767 = vsyncpa [#allocation3], 1 }
 0x24a   :  { %769 = vsyncpa [#allocation3 + $0x1], 1 }
 0x24b   :  { %770 = vsyncpa [#allocation6], 1 }
 0x24c   :  { %772 = vsyncpa [#allocation6 + $0x1], 1 }
 0x24d   :  { %773 = vsyncpa [#allocation4], 1 }
 0x24e   :  { %775 = vsyncpa [#allocation4 + $0x1], 1 }

</bundles_post_ra>
